<compile_context>
chip_gen: v7x
topology: tpu7x:2x2x1
jax: 0.10.0
libtpu: 0.0.40
codegen_flags: <defaults>
</compile_context>

<pallas_src>
import math

import jax
import jax.numpy as jnp
from jax.experimental import pallas as pl
from jax.experimental.pallas import tpu as pltpu


_LANE = 128
_SUBLANE = 8
# ~2 MiB per x block: with double-buffered x/out/v/mask this stays under the
# 16 MiB scoped-VMEM default on v5e (and trivially under v6e/v7x's 32 MiB),
# while being large enough (>512 lanes x many sublanes) to sit near the HBM
# roofline on all three generations.
_TARGET_TILE_BYTES = 2 * 1024 * 1024


def _add_vec_kernel(x_ref, v_ref, o_ref):
    # x_ref: (TM, W), v_ref: (1, W) -> broadcast add over rows.
    # v's BlockSpec index_map is constant, so its block is resident in VMEM.
    o_ref[...] = x_ref[...] + v_ref[...]


def _masked_add_vec_kernel(x_ref, v_ref, m_ref, o_ref):
    # x_ref: (TM, D), v_ref: (1, D), m_ref: (TM, 1) in x.dtype holding 1.0/0.0.
    # out = x + m * v  ==  where(mask, x + v, x)   (vector is finite by
    # construction: kaiming init + epsilon-norm clipping), and keeps a single
    # live (TM, D) tile instead of two plus a select.
    o_ref[...] = x_ref[...] + m_ref[...] * v_ref[...]


def _choose_row_tile(n_rows, bytes_per_row, target_bytes=_TARGET_TILE_BYTES):
    """Pick a sublane-aligned row tile of roughly `target_bytes`."""
    if n_rows <= _SUBLANE:
        return n_rows
    tm = max(_SUBLANE, target_bytes // max(1, bytes_per_row))
    tm = (tm // _SUBLANE) * _SUBLANE
    if tm >= n_rows:
        return n_rows
    return tm


def universal_vector_adversary_forward(x, vector, attack_mask=None):
    """x: (B, S, D); vector: (1, D); attack_mask: optional (B, S) bool.

    Returns dtype promote_types(x.dtype, vector.dtype) to match PyTorch's
    type-promotion semantics (e.g. bf16 activations + f32 parameter -> f32).
    """
    B, S, D = x.shape
    R = B * S
    out_dtype = jnp.promote_types(x.dtype, vector.dtype)
    out_itemsize = jnp.dtype(out_dtype).itemsize
    compiler_params = pltpu.CompilerParams(dimension_semantics=("parallel",))

    if attack_mask is None:
        # Lane-dense layout: fold `fold` rows into the lane dim so the last dim
        # of every block is a multiple of 128 lanes.
        fold = 1
        if D % _LANE != 0:
            k = math.lcm(D, _LANE) // D
            if R % k == 0:
                fold = k
        Rf, W = R // fold, D * fold
        x2 = x.reshape(Rf, W)
        v2 = jnp.tile(vector.reshape(1, D).astype(out_dtype), (1, fold))  # (1, W)

        tm = _choose_row_tile(Rf, W * out_itemsize)
        grid = (pl.cdiv(Rf, tm),)
        out = pl.pallas_call(
            _add_vec_kernel,
            out_shape=jax.ShapeDtypeStruct((Rf, W), out_dtype),
            grid=grid,
            in_specs=[
                pl.BlockSpec((tm, W), lambda i: (i, 0)),
                pl.BlockSpec((1, W), lambda i: (0, 0)),  # constant -> resident
            ],
            out_specs=pl.BlockSpec((tm, W), lambda i: (i, 0)),
            compiler_params=compiler_params,
        )(x2, v2)
        return out.reshape(B, S, D)

    # Masked path: row tiles over the flattened (B*S, D) view; per-row
    # multiplicative mask in x.dtype (tiny DMA vs the padded int32 select).
    x2 = x.reshape(R, D)
    v2 = vector.reshape(1, D).astype(out_dtype)
    m2 = attack_mask.reshape(R, 1).astype(x.dtype)

    tm = _choose_row_tile(R, D * out_itemsize)
    grid = (pl.cdiv(R, tm),)
    out = pl.pallas_call(
        _masked_add_vec_kernel,
        out_shape=jax.ShapeDtypeStruct((R, D), out_dtype),
        grid=grid,
        in_specs=[
            pl.BlockSpec((tm, D), lambda i: (i, 0)),
            pl.BlockSpec((1, D), lambda i: (0, 0)),  # constant -> resident
            pl.BlockSpec((tm, 1), lambda i: (i, 0)),
        ],
        out_specs=pl.BlockSpec((tm, D), lambda i: (i, 0)),
        compiler_params=compiler_params,
    )(x2, v2, m2)
    return out.reshape(B, S, D)


def init_vector(key, dim, dtype=jnp.float32):
    """Deterministic kaiming_uniform_ init for a (1, dim) parameter.

    torch.nn.init.kaiming_uniform_ (a=0, fan_in=dim, leaky_relu):
      gain = sqrt(2), bound = gain * sqrt(3 / fan_in) = sqrt(6 / dim)
    """
    bound = (6.0 / dim) ** 0.5
    return jax.random.uniform(key, (1, dim), dtype=dtype, minval=-bound, maxval=bound)


# TODO(synk): clip_attack() (epsilon-norm projection of the parameter) is a
# host-side parameter update, not part of forward(); left to plain JAX.


if __name__ == "__main__":
    B, S, D = 2, 8, 32
    key = jax.random.PRNGKey(0)
    kx, kv, km = jax.random.split(key, 3)

    x = jax.random.normal(kx, (B, S, D), dtype=jnp.float32)
    vector = init_vector(kv, D)
    attack_mask = jax.random.bernoulli(km, 0.5, (B, S))

    # Path 1: attack_mask is None  ->  x + vector
    out_plain = universal_vector_adversary_forward(x, vector, attack_mask=None)
    out_plain = jax.block_until_ready(out_plain)
    ref_plain = x + vector.reshape(1, 1, D)
    assert out_plain.shape == (B, S, D)
    assert jnp.allclose(out_plain, ref_plain, atol=1e-6), "plain path mismatch"

    # Path 2: attack_mask given -> where(mask[..., None], x + vector, x)
    out_masked = universal_vector_adversary_forward(x, vector, attack_mask=attack_mask)
    out_masked = jax.block_until_ready(out_masked)
    ref_masked = jnp.where(attack_mask[..., None], x + vector.reshape(1, 1, D), x)
    assert out_masked.shape == (B, S, D)
    assert jnp.allclose(out_masked, ref_masked, atol=1e-6), "masked path mismatch"

    print("KERNEL_OK")
</pallas_src>

<mosaic_0001>
module attributes {stable_mosaic.version = 11 : i64} {
  func.func @_add_vec_kernel(%arg0: i32, %arg1: memref<4x128xf32, #tpu.memory_space<vmem>>, %arg2: memref<1x128xf32, #tpu.memory_space<vmem>>, %arg3: memref<4x128xf32, #tpu.memory_space<vmem>>) attributes {dimension_semantics = [#tpu.dimension_semantics<parallel>], iteration_bounds = array<i64: 1>, scalar_prefetch = 0 : i64, scratch_operands = 0 : i64, tpu.core_type = #tpu.core_type<tc>, window_params = [{transform_indices = @transform_0, window_bounds = array<i64: 4, 128>}, {pipeline_mode = #tpu.pipeline_mode<synchronous>, transform_indices = @transform_1, window_bounds = array<i64: 1, 128>}, {transform_indices = @transform_2, window_bounds = array<i64: 4, 128>}]} {
    %c0 = arith.constant 0 : index
    %c0_0 = arith.constant 0 : index
    %0 = vector.load %arg1[%c0, %c0_0] : memref<4x128xf32, #tpu.memory_space<vmem>>, vector<4x128xf32>
    %c0_1 = arith.constant 0 : index
    %c0_2 = arith.constant 0 : index
    %1 = vector.load %arg2[%c0_1, %c0_2] : memref<1x128xf32, #tpu.memory_space<vmem>>, vector<1x128xf32>
    %2 = vector.broadcast %1 : vector<1x128xf32> to vector<4x128xf32>
    %3 = arith.addf %0, %2 : vector<4x128xf32>
    %c0_3 = arith.constant 0 : index
    %c0_4 = arith.constant 0 : index
    %4 = vector.load %arg3[%c0_3, %c0_4] : memref<4x128xf32, #tpu.memory_space<vmem>>, vector<4x128xf32>
    tpu.vector_store %arg3[%c0_3, %c0_4], %3 {strides = array<i32>} : memref<4x128xf32, #tpu.memory_space<vmem>>, vector<4x128xf32>,
    return
  }
  func.func @transform_0(%arg0: i32) -> (i32, i32) {
    %c0_i32 = arith.constant 0 : i32
    %c0_i32_0 = arith.constant 0 : i32
    return %arg0, %c0_i32 : i32, i32
  }
  func.func @transform_1(%arg0: i32) -> (i32, i32) {
    %c0_i32 = arith.constant 0 : i32
    %c0_i32_0 = arith.constant 0 : i32
    %c0_i32_1 = arith.constant 0 : i32
    return %c0_i32, %c0_i32_0 : i32, i32
  }
  func.func @transform_2(%arg0: i32) -> (i32, i32) {
    %c0_i32 = arith.constant 0 : i32
    %c0_i32_0 = arith.constant 0 : i32
    return %arg0, %c0_i32 : i32, i32
  }
}

</mosaic_0001>

<bundles_post_ra>
// kernel: tpu_custom_call.1
= control target key start
LH: loop header
LB: loop body
LE: loop exit
PB: predicated region body
PF: predicated region fallthrough
CT: control target
= control target key end

     0   :  { %7 = vsyncpa [#allocation3], 0  ;;  %s144_s0 = inlined_call_operand.hbm [shape: f32[4,128], index: 0, kind: input, shape index: {}]   ;;  %s145_s1 = inlined_call_operand.vmem [shape: f32[1,128], index: 1, kind: input, shape index: {}]   ;;  %s146_s2 = inlined_call_operand.hbm [shape: f32[4,128], index: 2, kind: output, shape index: {}]  }
   0x1   :  { %8 = vsyncpa [#allocation4], 0  ;;  %s100_s9 = smov [#allocation2]   ;;  %s52_s13 = scalar_lea.hbm %s144_s0, 64 }
   0x2   :  { %s15_s10 = sshll.u32 %s100_s9, 4  ;;  %p53_p0 = scmp.ne.s32.totalorder %s144_s0, %s52_s13  ;;  %s16_s10 = int_to_ptr.vmem [resolvable:$true] %s15_s10 }
   0x3   :  { %p56_p1 = scmp.lt.u32.totalorder %s52_s13, %s144_s0 }
   0x5   :  { %p58_p2 = pnand %p56_p1, %p53_p0 }
   0x7   :  { %61 = shalt.err (!%p58_p2)
}
   0x8   :  { %s62_s18 = scalar_lea.vmem %s16_s10, 64  ;;  %p67_p4 = scmp.lt.s32.totalorder %s16_s10, %s16_s10 }
   0x9   :  { %p63_p3 = scmp.ne.s32.totalorder %s16_s10, %s62_s18  ;;  %p68_p5 = scmp.lt.s32.totalorder %s62_s18, %s62_s18 }
   0xb   :  { %p69_p6 = por %p68_p5, %p67_p4 }
   0xd   :  { %p70_p7 = pnand %p69_p6, %p63_p3 }
   0xf   :  { %73 = shalt.err (!%p70_p7)
}
  0x10   :  { %18 = dma.hbm_to_vmem [thread:$0]  %s144_s0, 64, %s16_s10, [#allocation3]  }
  0x11   :  { %96 = dma.done.wait [#allocation3], 64  }
  0x12   :  { %97 = vsyncadd [#allocation3], 4294967232  ;;  %s101_s21 = smov [#allocation5]   ;;  %v24_v0 = vld [vmem:[#allocation2] sm:$0xf] }
  0x13   :  { %s40_s22 = sshll.u32 %s101_s21, 4  ;;  %v49_v1 = vld [vmem:[%s145_s1] ss:$0 sm:$0xff]  ;;  %s41_s22 = int_to_ptr.vmem [resolvable:$true] %s40_s22 }
  0x14   :  { %v32_v2 = vadd.f32 %v49_v1, %v24_v0  ;;  %s74_s25 = scalar_lea.vmem %s41_s22, 64  ;;  %p79_p9 = scmp.lt.s32.totalorder %s41_s22, %s41_s22 }
  0x15   :  { %p75_p8 = scmp.ne.s32.totalorder %s41_s22, %s74_s25  ;;  %p80_p10 = scmp.lt.s32.totalorder %s74_s25, %s74_s25 }
  0x16   :  { %33 = vst [vmem:[#allocation5] sm:$0xf] %v32_v2 }
  0x17   :  { %p81_p11 = por %p80_p10, %p79_p9 }
  0x19   :  { %p82_p12 = pnand %p81_p11, %p75_p8 }
  0x1b   :  { %85 = shalt.err (!%p82_p12)
}
  0x1c   :  { %s86_s27 = scalar_lea.hbm %s146_s2, 64 }
  0x1d   :  { %p87_p13 = scmp.ne.s32.totalorder %s146_s2, %s86_s27  ;;  %p90_p0 = scmp.lt.u32.totalorder %s86_s27, %s146_s2 }
  0x1f   :  { %p92_p1 = pnand %p90_p0, %p87_p13 }
  0x21   :  { %95 = shalt.err (!%p92_p1)
}
  0x22   :  { %43 = dma.vmem_to_hbm [thread:$0]  %s41_s22, 64, %s146_s2, [#allocation4]  }
  0x23   :  { %98 = dma.done.wait [#allocation4], 64  }
  0x24   :  { %99 = vsyncadd [#allocation4], 4294967232 }
  0x25   :  { %47 = vsyncpa [#allocation3], 1 }
  0x26   :  { %48 = vsyncpa [#allocation4], 1 }

</bundles_post_ra>
